<compile_context>
chip_gen: v7x
topology: tpu7x:2x2x1
jax: 0.10.0
libtpu: 0.0.40
codegen_flags: <defaults>
</compile_context>

<pallas_src>
import functools

import jax
import jax.numpy as jnp
from jax import lax
from jax.experimental import pallas as pl
from jax.experimental.pallas import tpu as pltpu


# ----------------------------------------------------------------------------
# helpers
# ----------------------------------------------------------------------------
def _pick_tile(dim, preferred):
    """Largest preferred tile evenly dividing `dim`, else the full dim
    (a full-extent block is always a legal TPU block shape)."""
    for t in preferred:
        if dim >= t and dim % t == 0:
            return t
    return dim


def _heads_per_block(heads, dim_head):
    """Smallest #heads packed per attention block so the block lane dim
    (hpb*dim_head) is a multiple of 128 (lane dense, unmasked stores, minimal
    head unroll); fall back to all heads (block == full h*d, always legal)."""
    for hpb in range(1, heads + 1):
        if heads % hpb == 0 and (hpb * dim_head) % 128 == 0:
            return hpb
    return heads


# ----------------------------------------------------------------------------
# tiled linear: y = x @ w (+ b), fp32 accumulation over the K axis
# ----------------------------------------------------------------------------
def _linear_kernel(x_ref, w_ref, o_ref, acc_ref):
    @pl.when(pl.program_id(2) == 0)
    def _():
        acc_ref[...] = jnp.zeros(acc_ref.shape, acc_ref.dtype)

    # native-dtype tiles straight into the MXU; accumulate in fp32
    acc_ref[...] += jnp.dot(x_ref[...], w_ref[...],
                            preferred_element_type=jnp.float32)

    @pl.when(pl.program_id(2) == pl.num_programs(2) - 1)
    def _():
        o_ref[...] = acc_ref[...].astype(o_ref.dtype)


def _linear_bias_kernel(x_ref, w_ref, b_ref, o_ref, acc_ref):
    @pl.when(pl.program_id(2) == 0)
    def _():
        acc_ref[...] = jnp.zeros(acc_ref.shape, acc_ref.dtype)

    acc_ref[...] += jnp.dot(x_ref[...], w_ref[...],
                            preferred_element_type=jnp.float32)

    @pl.when(pl.program_id(2) == pl.num_programs(2) - 1)
    def _():
        o_ref[...] = (acc_ref[...] + b_ref[...].astype(jnp.float32)
                      ).astype(o_ref.dtype)


def pallas_linear(x2d, w, b=None):
    """y = x2d @ w (+ b).  x2d: (M, K), w: (K, N), b: (N,) or None."""
    M, K = x2d.shape
    N = w.shape[1]
    tm = _pick_tile(M, (512, 256, 128, 64, 32, 16, 8))
    tn = _pick_tile(N, (512, 256, 128))          # lane dim: 128-multiple or full
    tk = _pick_tile(K, (1024, 512, 256, 128))    # bigger K tiles: fewer acc round trips
    grid = (M // tm, N // tn, K // tk)           # reduction axis (K) last

    in_specs = [
        pl.BlockSpec((tm, tk), lambda i, j, k: (i, k)),
        pl.BlockSpec((tk, tn), lambda i, j, k: (k, j)),
    ]
    args = (x2d, w)
    kernel = _linear_kernel
    if b is not None:
        in_specs.append(pl.BlockSpec((1, tn), lambda i, j, k: (0, j)))
        args = (x2d, w, b.reshape(1, N))
        kernel = _linear_bias_kernel

    return pl.pallas_call(
        kernel,
        out_shape=jax.ShapeDtypeStruct((M, N), x2d.dtype),
        grid_spec=pltpu.PrefetchScalarGridSpec(
            num_scalar_prefetch=0,
            grid=grid,
            in_specs=in_specs,
            out_specs=pl.BlockSpec((tm, tn), lambda i, j, k: (i, j)),
            scratch_shapes=[pltpu.VMEM((tm, tn), jnp.float32)],
        ),
        compiler_params=pltpu.CompilerParams(
            dimension_semantics=("parallel", "parallel", "arbitrary")),
    )(*args)


# ----------------------------------------------------------------------------
# flash-style attention over (B, L, n_blocks*hpb*d) slabs
# ----------------------------------------------------------------------------
def _flash_attn_kernel(q_ref, k_ref, v_ref, o_ref, m_sc, l_sc, acc_sc, q_sc, *,
                       heads_per_block, dim_head, scale, exp_dtype):
    # q_ref: (1, tq, hpb*d)   k_ref / v_ref: (1, tk, hpb*d)   o_ref: (1, tq, hpb*d)
    # m_sc / l_sc: (hpb, tq, 1) fp32   acc_sc: (hpb, tq, d) fp32
    # q_sc: (hpb, tq, d) in q dtype (staged, pre-scaled)
    ki = pl.program_id(3)
    d = dim_head

    @pl.when(ki == 0)
    def _():
        m_sc[...] = jnp.full(m_sc.shape, -jnp.inf, dtype=m_sc.dtype)
        l_sc[...] = jnp.zeros(l_sc.shape, l_sc.dtype)
        acc_sc[...] = jnp.zeros(acc_sc.shape, acc_sc.dtype)
        # hoist per-head lane extraction + softmax scale out of the KV loop:
        # done once per q block, not once per KV step
        for hh in range(heads_per_block):
            q_sc[hh] = q_ref[0, :, hh * d:(hh + 1) * d] * scale

    for hh in range(heads_per_block):
        sl = slice(hh * d, (hh + 1) * d)
        k_h = k_ref[0, :, sl]                         # (tk, d) native dtype
        v_h = v_ref[0, :, sl]                         # (tk, d)
        q_h = q_sc[hh]                                # (tq, d) pre-scaled

        # scores: contract the last dims directly (no explicit k.T), fp32 accum
        s = lax.dot_general(q_h, k_h, (((1,), (1,)), ((), ())),
                            preferred_element_type=jnp.float32)   # (tq, tk) f32

        m_prev = m_sc[hh]                                          # (tq, 1)
        m_new = jnp.maximum(m_prev, jnp.max(s, axis=-1, keepdims=True))
        alpha = jnp.exp(m_prev - m_new)
        # exp in bf16 only for bf16 activations (v6e/v7x EUP), fp32 otherwise
        p = jnp.exp((s - m_new).astype(exp_dtype))                 # (tq, tk)
        p_sum = jnp.sum(p if p.dtype == jnp.float32 else p.astype(jnp.float32),
                        axis=-1, keepdims=True)
        l_sc[hh] = alpha * l_sc[hh] + p_sum
        m_sc[hh] = m_new

        pv = lax.dot_general(p.astype(v_h.dtype), v_h,
                             (((1,), (0,)), ((), ())),
                             preferred_element_type=jnp.float32)   # (tq, d) f32
        # aligned first-axis-indexed accumulator tile (no masked lane RMW)
        acc_sc[hh] = alpha * acc_sc[hh] + pv

    @pl.when(ki == pl.num_programs(3) - 1)
    def _():
        outs = []
        for hh in range(heads_per_block):
            inv = pl.reciprocal(l_sc[hh])            # exact; once per block
            outs.append((acc_sc[hh] * inv).astype(o_ref.dtype))
        # head -> lane packing happens once, single lane-dense store
        o_ref[0] = (jnp.concatenate(outs, axis=-1)
                    if heads_per_block > 1 else outs[0])


def _q_map(off):
    return lambda b, hb, qi, ki: (b, qi, off + hb)


def _kv_map(off):
    return lambda b, hb, qi, ki: (b, ki, off + hb)


def pallas_flash_attention(q_arr, k_arr, v_arr, *, heads, dim_head, scale,
                           q_head_off=0, k_head_off=0, v_head_off=0):
    """softmax(q k^T * scale) v per head, online softmax over KV tiles.

    q_arr / k_arr / v_arr may be fused projection slabs (e.g. the same
    (B, M, 2*h*d) kv array passed twice, or a (B, N, 3*h*d) qkv array passed
    three times); *_head_off selects the q/k/v section in units of heads.
    Output: (B, N, h*d) in q_arr.dtype.  Head split/merge is folded into the
    BlockSpec index_maps (no host-side '(b h) n d' transposes)."""
    B, N, _ = q_arr.shape
    M = k_arr.shape[1]
    HD = heads * dim_head
    hpb = _heads_per_block(heads, dim_head)
    hd_blk = hpb * dim_head
    n_hb = heads // hpb
    q_off, k_off, v_off = (q_head_off // hpb, k_head_off // hpb,
                           v_head_off // hpb)
    tq = _pick_tile(N, (512, 256, 128, 64, 32, 16, 8))
    tk = _pick_tile(M, (1024, 512, 256, 128, 64, 32, 16, 8))
    exp_dtype = jnp.bfloat16 if q_arr.dtype == jnp.bfloat16 else jnp.float32

    kernel = functools.partial(_flash_attn_kernel, heads_per_block=hpb,
                               dim_head=dim_head, scale=scale,
                               exp_dtype=exp_dtype)
    return pl.pallas_call(
        kernel,
        out_shape=jax.ShapeDtypeStruct((B, N, HD), q_arr.dtype),
        grid_spec=pltpu.PrefetchScalarGridSpec(
            num_scalar_prefetch=0,
            grid=(B, n_hb, N // tq, M // tk),          # KV reduction axis last
            in_specs=[
                pl.BlockSpec((1, tq, hd_blk), _q_map(q_off)),
                pl.BlockSpec((1, tk, hd_blk), _kv_map(k_off)),
                pl.BlockSpec((1, tk, hd_blk), _kv_map(v_off)),
            ],
            out_specs=pl.BlockSpec((1, tq, hd_blk),
                                   lambda b, hb, qi, ki: (b, qi, hb)),
            scratch_shapes=[
                pltpu.VMEM((hpb, tq, 1), jnp.float32),         # running row max
                pltpu.VMEM((hpb, tq, 1), jnp.float32),         # running row sum
                pltpu.VMEM((hpb, tq, dim_head), jnp.float32),  # output accumulator
                pltpu.VMEM((hpb, tq, dim_head), q_arr.dtype),  # staged scaled q
            ],
        ),
        compiler_params=pltpu.CompilerParams(
            dimension_semantics=("parallel", "parallel", "parallel",
                                 "arbitrary")),
    )(q_arr, k_arr, v_arr)


# ----------------------------------------------------------------------------
# module equivalent
# ----------------------------------------------------------------------------
def init_cross_attention_params(key, query_dim, context_dim=None, heads=8,
                                dim_head=64, dtype=jnp.float32):
    context_dim = query_dim if context_dim is None else context_dim
    inner_dim = dim_head * heads
    k0, k1, k2, k3 = jax.random.split(key, 4)
    # weights stored pre-transposed, so y = x @ W  (PyTorch: y = x @ W.T)
    return {
        "to_q": jax.random.normal(k0, (query_dim, inner_dim), dtype) * 0.02,
        "to_k": jax.random.normal(k1, (context_dim, inner_dim), dtype) * 0.02,
        "to_v": jax.random.normal(k2, (context_dim, inner_dim), dtype) * 0.02,
        "to_out_w": jax.random.normal(k3, (inner_dim, query_dim), dtype) * 0.02,
        "to_out_b": jnp.zeros((query_dim,), dtype),
        "heads": heads,
        "dim_head": dim_head,
        "scale": float(dim_head) ** -0.5,
    }


def cross_attention_doggettx_forward(params, x, context=None, mask=None):
    """x: (B, N, query_dim), context: (B, M, context_dim) or None.
    mask is accepted but unused, matching the Doggettx reference forward."""
    h = params["heads"]
    d = params["dim_head"]
    inner = h * d
    scale = params["scale"]
    B, N, _ = x.shape
    self_attn = context is None
    ctx = x if self_attn else context
    M = ctx.shape[1]

    hpb = _heads_per_block(h, d)
    # fused projection slabs are only addressable by the attention BlockSpecs
    # when the head-block lane width is 128-aligned
    fuse = (hpb * d) % 128 == 0

    x2d = x.reshape(B * N, -1)
    ctx2d = ctx.reshape(B * M, -1)

    if fuse and self_attn:
        # one GEMM reads x once and emits q|k|v; attention indexes the slab
        w_qkv = jnp.concatenate(
            [params["to_q"], params["to_k"], params["to_v"]], axis=1)
        qkv = pallas_linear(x2d, w_qkv).reshape(B, N, 3 * inner)
        r2 = pallas_flash_attention(qkv, qkv, qkv, heads=h, dim_head=d,
                                    scale=scale, q_head_off=0,
                                    k_head_off=h, v_head_off=2 * h)
    elif fuse:
        q_in = pallas_linear(x2d, params["to_q"]).reshape(B, N, inner)
        w_kv = jnp.concatenate([params["to_k"], params["to_v"]], axis=1)
        kv = pallas_linear(ctx2d, w_kv).reshape(B, M, 2 * inner)
        r2 = pallas_flash_attention(q_in, kv, kv, heads=h, dim_head=d,
                                    scale=scale, k_head_off=0, v_head_off=h)
    else:
        # tiny / oddly-shaped head blocks: separate projections (always legal)
        q_in = pallas_linear(x2d, params["to_q"]).reshape(B, N, inner)
        k_in = pallas_linear(ctx2d, params["to_k"]).reshape(B, M, inner)
        v_in = pallas_linear(ctx2d, params["to_v"]).reshape(B, M, inner)
        r2 = pallas_flash_attention(q_in, k_in, v_in, heads=h, dim_head=d,
                                    scale=scale)

    # to_out: Linear(inner_dim, query_dim) + Dropout(p=0.0) -> identity dropout
    out = pallas_linear(r2.reshape(B * N, inner),
                        params["to_out_w"], params["to_out_b"])
    return out.reshape(B, N, -1)


# ----------------------------------------------------------------------------
# plain-JAX reference for verification
# ----------------------------------------------------------------------------
def _reference_forward(params, x, context=None):
    h, d = params["heads"], params["dim_head"]
    B, N, _ = x.shape
    ctx = x if context is None else context
    M = ctx.shape[1]
    q = (x @ params["to_q"]).reshape(B, N, h, d).transpose(0, 2, 1, 3)
    k = (ctx @ params["to_k"]).reshape(B, M, h, d).transpose(0, 2, 1, 3)
    v = (ctx @ params["to_v"]).reshape(B, M, h, d).transpose(0, 2, 1, 3)
    s = jnp.einsum("bhid,bhjd->bhij", q.astype(jnp.float32),
                   k.astype(jnp.float32)) * params["scale"]
    p = jax.nn.softmax(s, axis=-1)
    r = jnp.einsum("bhij,bhjd->bhid", p, v.astype(jnp.float32))
    r = r.transpose(0, 2, 1, 3).reshape(B, N, h * d).astype(x.dtype)
    return r @ params["to_out_w"] + params["to_out_b"]


# ----------------------------------------------------------------------------
if __name__ == "__main__":
    key = jax.random.PRNGKey(0)
    k_params, k_x, k_ctx = jax.random.split(key, 3)

    B = 2            # batch
    N = 16           # query tokens
    M = 8            # context tokens
    QUERY_DIM = 32
    CONTEXT_DIM = 32
    HEADS = 2
    DIM_HEAD = 64    # inner_dim = 128 -> exercises the fused, 128-lane path

    params = init_cross_attention_params(
        k_params, QUERY_DIM, CONTEXT_DIM, heads=HEADS, dim_head=DIM_HEAD)

    x = jax.random.normal(k_x, (B, N, QUERY_DIM), jnp.float32)
    context = jax.random.normal(k_ctx, (B, M, CONTEXT_DIM), jnp.float32)

    # cross-attention path (fused K/V projection)
    out = cross_attention_doggettx_forward(params, x, context)
    out = jax.block_until_ready(out)
    ref = _reference_forward(params, x, context)
    assert out.shape == (B, N, QUERY_DIM), out.shape
    err = float(jnp.max(jnp.abs(out - ref)))
    assert jnp.allclose(out, ref, atol=2e-3, rtol=2e-3), err

    # self-attention path (fused Q/K/V projection)
    out_self = jax.block_until_ready(cross_attention_doggettx_forward(params, x))
    ref_self = _reference_forward(params, x)
    err_self = float(jnp.max(jnp.abs(out_self - ref_self)))
    assert jnp.allclose(out_self, ref_self, atol=2e-3, rtol=2e-3), err_self

    print("KERNEL_OK")
</pallas_src>

<mosaic_0001>
module attributes {stable_mosaic.version = 11 : i64} {
  func.func @_linear_kernel(%arg0: i32, %arg1: i32, %arg2: i32, %arg3: memref<32x32xf32, #tpu.memory_space<vmem>>, %arg4: memref<32x128xf32, #tpu.memory_space<vmem>>, %arg5: memref<32x128xf32, #tpu.memory_space<vmem>>, %arg6: memref<32x128xf32, #tpu.memory_space<vmem>>) attributes {dimension_semantics = [#tpu.dimension_semantics<parallel>, #tpu.dimension_semantics<parallel>, #tpu.dimension_semantics<arbitrary>], iteration_bounds = array<i64: 1, 1, 1>, scalar_prefetch = 0 : i64, scratch_operands = 1 : i64, tpu.core_type = #tpu.core_type<tc>, window_params = [{transform_indices = @transform_0, window_bounds = array<i64: 32, 32>}, {transform_indices = @transform_1, window_bounds = array<i64: 32, 128>}, {transform_indices = @transform_2, window_bounds = array<i64: 32, 128>}]} {
    %c0_i32 = arith.constant 0 : i32
    %0 = arith.cmpi eq, %arg2, %c0_i32 : i32
    %1 = arith.extui %0 : i1 to i32
    %c0_i32_0 = arith.constant 0 : i32
    %2 = arith.cmpi ne, %1, %c0_i32_0 : i32
    scf.if %2 {
      %cst_10 = arith.constant 0.000000e+00 : f32
      %12 = vector.broadcast %cst_10 : f32 to vector<32x128xf32>
      %c0_11 = arith.constant 0 : index
      %c0_12 = arith.constant 0 : index
      %13 = vector.load %arg6[%c0_11, %c0_12] : memref<32x128xf32, #tpu.memory_space<vmem>>, vector<32x128xf32>
      tpu.vector_store %arg6[%c0_11, %c0_12], %12 {strides = array<i32>} : memref<32x128xf32, #tpu.memory_space<vmem>>, vector<32x128xf32>,
    } else {
    }
    %c0 = arith.constant 0 : index
    %c0_1 = arith.constant 0 : index
    %3 = vector.load %arg6[%c0, %c0_1] : memref<32x128xf32, #tpu.memory_space<vmem>>, vector<32x128xf32>
    %c0_2 = arith.constant 0 : index
    %c0_3 = arith.constant 0 : index
    %4 = vector.load %arg3[%c0_2, %c0_3] : memref<32x32xf32, #tpu.memory_space<vmem>>, vector<32x32xf32>
    %c0_4 = arith.constant 0 : index
    %c0_5 = arith.constant 0 : index
    %5 = vector.load %arg4[%c0_4, %c0_5] : memref<32x128xf32, #tpu.memory_space<vmem>>, vector<32x128xf32>
    %cst = arith.constant dense<0.000000e+00> : vector<32x128xf32>
    %6 = tpu.matmul %4, %5, %cst {dimension_numbers = #tpu.dot_dimension_numbers<[1], [0], [0], [1], [0, 0, 1, 1], [], []>} : vector<32x32xf32>, vector<32x128xf32>, vector<32x128xf32> -> vector<32x128xf32>
    %7 = arith.addf %3, %6 : vector<32x128xf32>
    %c0_6 = arith.constant 0 : index
    %c0_7 = arith.constant 0 : index
    %8 = vector.load %arg6[%c0_6, %c0_7] : memref<32x128xf32, #tpu.memory_space<vmem>>, vector<32x128xf32>
    tpu.vector_store %arg6[%c0_6, %c0_7], %7 {strides = array<i32>} : memref<32x128xf32, #tpu.memory_space<vmem>>, vector<32x128xf32>,
    %c0_i32_8 = arith.constant 0 : i32
    %9 = arith.cmpi eq, %arg2, %c0_i32_8 : i32
    %10 = arith.extui %9 : i1 to i32
    %c0_i32_9 = arith.constant 0 : i32
    %11 = arith.cmpi ne, %10, %c0_i32_9 : i32
    scf.if %11 {
      %c0_10 = arith.constant 0 : index
      %c0_11 = arith.constant 0 : index
      %12 = vector.load %arg6[%c0_10, %c0_11] : memref<32x128xf32, #tpu.memory_space<vmem>>, vector<32x128xf32>
      %c0_12 = arith.constant 0 : index
      %c0_13 = arith.constant 0 : index
      %13 = vector.load %arg5[%c0_12, %c0_13] : memref<32x128xf32, #tpu.memory_space<vmem>>, vector<32x128xf32>
      tpu.vector_store %arg5[%c0_12, %c0_13], %12 {strides = array<i32>} : memref<32x128xf32, #tpu.memory_space<vmem>>, vector<32x128xf32>,
    } else {
    }
    return
  }
  func.func @transform_0(%arg0: i32, %arg1: i32, %arg2: i32) -> (i32, i32) {
    %c0_i32 = arith.constant 0 : i32
    return %arg0, %arg2 : i32, i32
  }
  func.func @transform_1(%arg0: i32, %arg1: i32, %arg2: i32) -> (i32, i32) {
    %c0_i32 = arith.constant 0 : i32
    return %arg2, %arg1 : i32, i32
  }
  func.func @transform_2(%arg0: i32, %arg1: i32, %arg2: i32) -> (i32, i32) {
    %c0_i32 = arith.constant 0 : i32
    return %arg0, %arg1 : i32, i32
  }
}

</mosaic_0001>

<bundles_post_ra>
// kernel: tpu_custom_call.1
= control target key start
LH: loop header
LB: loop body
LE: loop exit
PB: predicated region body
PF: predicated region fallthrough
CT: control target
= control target key end

     0   :  { %7 = vsyncpa [#allocation4], 0  ;;  %s379_s0 = inlined_call_operand.hbm [shape: f32[32,32], index: 0, kind: input, shape index: {}]   ;;  %s380_s1 = inlined_call_operand.hbm [shape: f32[32,128], index: 1, kind: input, shape index: {}]   ;;  %s381_s2 = inlined_call_operand.hbm [shape: f32[32,128], index: 2, kind: output, shape index: {}]  }
   0x1   :  { %8 = vsyncpa [#allocation7], 0 }
   0x2   :  { %9 = vsyncpa [#allocation5], 0  ;;  %s310_s9 = smov [#allocation3]   ;;  %s238_s13 = scalar_lea.hbm %s379_s0, 512 }
   0x3   :  { %s15_s10 = sshll.u32 %s310_s9, 4  ;;  %p239_p0 = scmp.ne.s32.totalorder %s379_s0, %s238_s13  ;;  %s16_s10 = int_to_ptr.vmem [resolvable:$true] %s15_s10 }
   0x4   :  { %p242_p1 = scmp.lt.u32.totalorder %s238_s13, %s379_s0 }
   0x6   :  { %p244_p2 = pnand %p242_p1, %p239_p0 }
   0x8   :  { %247 = shalt.err (!%p244_p2)
}
   0x9   :  { %s248_s18 = scalar_lea.vmem %s16_s10, 512  ;;  %p253_p4 = scmp.lt.s32.totalorder %s16_s10, %s16_s10 }
   0xa   :  { %p249_p3 = scmp.ne.s32.totalorder %s16_s10, %s248_s18  ;;  %p254_p5 = scmp.lt.s32.totalorder %s248_s18, %s248_s18 }
   0xc   :  { %p255_p6 = por %p254_p5, %p253_p4 }
   0xe   :  { %p256_p7 = pnand %p255_p6, %p249_p3 }
  0x10   :  { %259 = shalt.err (!%p256_p7)
}
  0x11   :  { %s311_s19 = smov 128   ;;  %s312_s20 = smov 8  }
  0x12   :  { %21 = dma.hbm_to_vmem [thread:$0]  %s379_s0, 512, %s16_s10, [#allocation4], %s311_s19, %s311_s19, %s312_s20  }
  0x13   :  { %s313_s23 = smov [#allocation6]   ;;  %s260_s27 = scalar_lea.hbm %s380_s1, 512 }
  0x14   :  { %s27_s24 = sshll.u32 %s313_s23, 4  ;;  %p261_p8 = scmp.ne.s32.totalorder %s380_s1, %s260_s27  ;;  %s28_s24 = int_to_ptr.vmem [resolvable:$true] %s27_s24 }
  0x15   :  { %p264_p9 = scmp.lt.u32.totalorder %s260_s27, %s380_s1 }
  0x17   :  { %p266_p10 = pnand %p264_p9, %p261_p8 }
  0x19   :  { %269 = shalt.err (!%p266_p10)
}
  0x1a   :  { %s270_s4 = scalar_lea.vmem %s28_s24, 512  ;;  %p275_p12 = scmp.lt.s32.totalorder %s28_s24, %s28_s24 }
  0x1b   :  { %p271_p11 = scmp.ne.s32.totalorder %s28_s24, %s270_s4  ;;  %p276_p13 = scmp.lt.s32.totalorder %s270_s4, %s270_s4 }
  0x1d   :  { %p277_p0 = por %p276_p13, %p275_p12 }
  0x1f   :  { %p278_p1 = pnand %p277_p0, %p271_p11 }
  0x21   :  { %281 = shalt.err (!%p278_p1)
}
  0x22   :  { %33 = dma.hbm_to_vmem [thread:$0]  %s380_s1, 512, %s28_s24, [#allocation7], %s311_s19, %s311_s19, %s312_s20  }
  0x23   :  { %304 = dma.done.wait [#allocation4], 512  }
  0x24   :  { %305 = vsyncadd [#allocation4], 4294966784 }
  0x25   :  { %306 = dma.done.wait [#allocation7], 512  }
  0x26   :  { %307 = vsyncadd [#allocation7], 4294966784  ;;  %vm60_vm0 = vcmask 261120   ;;  %v56_v0 = vld [vmem:[#allocation6] sm:$0xff]  ;;  %v57_v1 = vld [vmem:[#allocation6 + $0x8] sm:$0xff]  ;;  %s314_s1 = smov [#allocation8]  }
  0x27   :  { %v58_v2 = vld [vmem:[#allocation6 + $0x10] sm:$0xff]  ;;  %v221_v3 = vpack.c.bf16 %v57_v1, %v56_v0  ;;  %v59_v4 = vld [vmem:[#allocation6 + $0x18] sm:$0xff]  ;;  %v52_v5 = vld [vmem:[#allocation3] sm:$0xff]  ;;  %s182_s6 = sshll.u32 %s314_s1, 4  ;;  %s183_s6 = int_to_ptr.vmem [resolvable:$true] %s182_s6 }
  0x28   :  { %v54_v6 = vld [vmem:[#allocation3 + $0x10] sm:$0xff]  ;;  %v225_v7 = vpack.c.bf16 %v59_v4, %v58_v2  ;;  %215 = vmatprep.mubr.msk.f32.mxu0 %vm60_vm0, %v52_v5  ;;  %v53_v8 = vld [vmem:[#allocation3 + $0x8] sm:$0xff]  ;;  %v55_v9 = vld [vmem:[#allocation3 + $0x18] sm:$0xff]  ;;  %s282_s7 = scalar_lea.vmem %s183_s6, 512  ;;  %p287_p3 = scmp.lt.s32.totalorder %s183_s6, %s183_s6 }
  0x29   :  { %218 = vmatprep.mubr.msk.f32.mxu1 %vm60_vm0, %v54_v6  ;;  %222 = vmatprep.subr.bf16.mxu0 %v221_v3  ;;  %p283_p2 = scmp.ne.s32.totalorder %s183_s6, %s282_s7  ;;  %p288_p4 = scmp.lt.s32.totalorder %s282_s7, %s282_s7 }
  0x2a   :  { %229 = vmatprep.subr.bf16.mxu1 %v221_v3  ;;  %224 = vmatpush3.bf16.msra.mxu0 %v221_v3 }
  0x2b   :  { %231 = vmatpush3.bf16.msra.mxu1 %v221_v3  ;;  %226 = vmatprep.subr.bf16.mxu0 %v225_v7  ;;  %p289_p5 = por %p288_p4, %p287_p3 }
  0x2c   :  { %230 = vmatprep.subr.bf16.mxu1 %v225_v7 }
  0x2d   :  { %p290_p6 = pnand %p289_p5, %p283_p2 }
  0x2e   :  { %228 = vmatpush3.bf16.msra.mxu0 %v225_v7 }
  0x2f   :  { %232 = vmatpush3.bf16.msra.mxu1 %v225_v7 }
  0x31   :  { %216 = vmatmul.mubr.msk.f32.vlgmr.msra.gmra.mrb[0].mxu0 %vm60_vm0, %v53_v8 }
  0x32   :  { %219 = vmatmul.mubr.msk.f32.vlgmr.msra.gmra.mrb[0].mxu1 %vm60_vm0, %v55_v9 }
 0x104   :  { %v217_v10 = vpop.f32.mrb[0].mxu0 }
 0x105   :  { %v220_v11 = vpop.f32.mrb[0].mxu1  ;;  %174 = vst [vmem:[#allocation8 + $0x8] sm:$0xff] %v217_v10  ;;  %v139_v12 = vpop.f32.mrb[1].mxu0 }
 0x106   :  { %176 = vst [vmem:[#allocation8 + $0x18] sm:$0xff] %v220_v11  ;;  %v149_v13 = vpop.f32.mrb[1].mxu1  ;;  %173 = vst [vmem:[#allocation8] sm:$0xff] %v139_v12 }
 0x107   :  { %175 = vst [vmem:[#allocation8 + $0x10] sm:$0xff] %v149_v13 }
 0x108   :  { %293 = shalt.err (!%p290_p6)
}
 0x109   :  { %s294_s10 = scalar_lea.hbm %s381_s2, 512 }
 0x10a   :  { %p295_p7 = scmp.ne.s32.totalorder %s381_s2, %s294_s10  ;;  %p298_p8 = scmp.lt.u32.totalorder %s294_s10, %s381_s2 }
 0x10c   :  { %p300_p9 = pnand %p298_p8, %p295_p7 }
 0x10e   :  { %303 = shalt.err (!%p300_p9)
}
 0x10f   :  { %188 = dma.vmem_to_hbm [thread:$0]  %s183_s6, 512, %s381_s2, [#allocation5], %s311_s19, %s311_s19, %s312_s20  }
 0x110   :  { %308 = dma.done.wait [#allocation5], 512  }
 0x111   :  { %309 = vsyncadd [#allocation5], 4294966784 }
 0x112   :  { %192 = vsyncpa [#allocation4], 1 }
 0x113   :  { %193 = vsyncpa [#allocation7], 1 }
 0x114   :  { %194 = vsyncpa [#allocation5], 1 }

</bundles_post_ra>
